<compile_context>
chip_gen: v7x
topology: tpu7x:2x2x1
jax: 0.10.0
libtpu: 0.0.40
codegen_flags: <defaults>
</compile_context>

<pallas_src>
import numpy as np
import jax
import jax.numpy as jnp
from jax.experimental import pallas as pl
from jax.experimental.pallas import tpu as pltpu


def _round_up(n, m):
    return ((n + m - 1) // m) * m


def _fc1_relu_kernel(x_ref, w_ref, b_ref, o_ref):
    # MXU matmul: the x tile is cast in-kernel (cheap VPU work hidden under the
    # DMA shadow) to the weight's dtype (bf16 by default); accumulation is f32.
    # Bias add + ReLU on the VPU; store in the requested output dtype.
    y = jnp.dot(x_ref[...].astype(w_ref.dtype), w_ref[...],
                preferred_element_type=jnp.float32)
    o_ref[...] = jnp.maximum(y + b_ref[...], 0.0).astype(o_ref.dtype)


def _block_diag_weight(w, pack):
    """(F_in, F_out) -> (pack*F_in, pack*F_out) block-diagonal replication."""
    eye = jnp.eye(pack, dtype=w.dtype)
    f_in, f_out = w.shape
    return jnp.einsum("pq,io->piqo", eye, w).reshape(pack * f_in, pack * f_out)


def fc1_relu(x, w, b, *, tm=8192, mxu_dtype=jnp.bfloat16, out_dtype=jnp.float32):
    """relu(x @ w + b).

    x: (B, F_in) f32, w: (F_in, F_out), b: (F_out,)  ->  (B, F_out) out_dtype.
    mxu_dtype: dtype of the MXU operands (x tile cast in-kernel, weight
               pre-cast -- the HBM x stream stays in its native dtype).
               None -> full f32 matmul (tight-tolerance path).
    out_dtype: output element type (bf16 halves output HBM traffic).
    tm:        row tile in ORIGINAL rows; large to amortize per-step overhead,
               automatically capped so the grid keeps >=2 steps (v7x dual-TC).
    """
    B, F_in = x.shape
    F_out = w.shape[1]

    b = b.astype(jnp.float32)
    w_mxu_dtype = mxu_dtype if mxu_dtype is not None else w.dtype

    lane_dense = (F_out < 128) and (128 % F_out == 0)
    pack = 128 // F_out if lane_dense else 1
    row_align = pack * 8  # original rows per (8, 128) output tile

    # Pad the batch only up to row_align (<=127 rows); this is a no-op (zero
    # copies) when B is already aligned.  Partial row *tiles* are handled by
    # the cdiv grid + Pallas edge-block masking, so we never pad up to tm.
    B_pad = _round_up(B, row_align)
    if B_pad != B:
        x = jnp.pad(x, ((0, B_pad - B), (0, 0)))

    cparams = pltpu.CompilerParams(dimension_semantics=("parallel",))
    out_isize = np.dtype(out_dtype).itemsize

    if lane_dense:
        # Pack `pack` consecutive rows into one 128-lane row (free row-major
        # reshape) and use a block-diagonal weight so the kernel's output block
        # is (.., 128): unmasked full-lane stores.
        R = B_pad // pack                      # packed rows
        x_p = x.reshape(R, pack * F_in)
        # TODO(synk): hoist w_p / b_p construction out of the per-call path if
        # this is invoked repeatedly with the same weights (tiny but avoidable).
        w_p = _block_diag_weight(w, pack).astype(w_mxu_dtype)
        b_p = jnp.tile(b, pack).reshape(1, pack * F_out)

        # Row tile in packed rows: big (default 512 packed = 8192 original
        # rows, ~1.8 MB f32/step) to approach HBM roofline, capped so the grid
        # has >=2 steps whenever there is enough work.
        tr = max(8, _round_up(tm, row_align) // pack)
        tr = min(tr, max(8, _round_up(pl.cdiv(R, 2), 8)))
        grid = (pl.cdiv(R, tr),)

        cost = pl.CostEstimate(
            flops=2 * R * (pack * F_in) * (pack * F_out),   # actual packed FLOPs
            bytes_accessed=(R * pack * F_in * x_p.dtype.itemsize
                            + (pack * F_in) * (pack * F_out) * w_p.dtype.itemsize
                            + pack * F_out * 4
                            + R * pack * F_out * out_isize),
            transcendentals=0,
        )

        out = pl.pallas_call(
            _fc1_relu_kernel,
            out_shape=jax.ShapeDtypeStruct((R, pack * F_out), out_dtype),
            grid_spec=pl.GridSpec(
                grid=grid,
                in_specs=[
                    pl.BlockSpec((tr, pack * F_in), lambda i: (i, 0)),    # stream x
                    pl.BlockSpec((pack * F_in, pack * F_out),
                                 lambda i: (0, 0)),                       # resident W
                    pl.BlockSpec((1, pack * F_out), lambda i: (0, 0)),    # resident b
                ],
                out_specs=pl.BlockSpec((tr, pack * F_out), lambda i: (i, 0)),
            ),
            compiler_params=cparams,
            cost_estimate=cost,
        )(x_p, w_p, b_p)
        out = out.reshape(B_pad, F_out)
    else:
        # Generic (non-packed) fallback for F_out that doesn't divide 128.
        w_f = w.astype(w_mxu_dtype)
        b2 = b.reshape(1, F_out)
        tm_eff = max(8, _round_up(tm, 8))
        tm_eff = min(tm_eff, max(8, _round_up(pl.cdiv(B_pad, 2), 8)))
        grid = (pl.cdiv(B_pad, tm_eff),)

        cost = pl.CostEstimate(
            flops=2 * B_pad * F_in * F_out,
            bytes_accessed=(B_pad * F_in * x.dtype.itemsize
                            + F_in * F_out * w_f.dtype.itemsize
                            + F_out * 4
                            + B_pad * F_out * out_isize),
            transcendentals=0,
        )

        out = pl.pallas_call(
            _fc1_relu_kernel,
            out_shape=jax.ShapeDtypeStruct((B_pad, F_out), out_dtype),
            grid_spec=pl.GridSpec(
                grid=grid,
                in_specs=[
                    pl.BlockSpec((tm_eff, F_in), lambda i: (i, 0)),
                    pl.BlockSpec((F_in, F_out), lambda i: (0, 0)),
                    pl.BlockSpec((1, F_out), lambda i: (0, 0)),
                ],
                out_specs=pl.BlockSpec((tm_eff, F_out), lambda i: (i, 0)),
            ),
            compiler_params=cparams,
            cost_estimate=cost,
        )(x, w_f, b2)

    return out[:B]


def init_params(key, input_features=54, output_features=8):
    # Deterministic init mirroring nn.Linear's uniform(-1/sqrt(fan_in), 1/sqrt(fan_in)).
    k_w, k_b = jax.random.split(key)
    bound = 1.0 / jnp.sqrt(jnp.float32(input_features))
    w = jax.random.uniform(k_w, (input_features, output_features),
                           jnp.float32, -bound, bound)
    b = jax.random.uniform(k_b, (output_features,), jnp.float32, -bound, bound)
    return w, b


if __name__ == "__main__":
    key = jax.random.PRNGKey(0)
    k_x, k_p = jax.random.split(key)

    B, F_in, F_out = 8, 54, 8
    x = jax.random.normal(k_x, (B, F_in), jnp.float32)
    w, b = init_params(k_p, F_in, F_out)
    ref = jnp.maximum(x @ w + b, 0.0)

    # Exact f32 MXU path (tight tolerance).
    out_f32 = fc1_relu(x, w, b, mxu_dtype=None)
    jax.block_until_ready(out_f32)
    assert out_f32.shape == (B, F_out)
    assert jnp.allclose(out_f32, ref, atol=1e-5, rtol=1e-5)

    # Default path: bf16 MXU operands (f32 accumulation), f32 output.
    out = fc1_relu(x, w, b)
    jax.block_until_ready(out)
    assert jnp.allclose(out, ref, atol=2e-2, rtol=2e-2)

    # Multi-tile path: batch not a multiple of 128, small row tile so the grid
    # has >=2 steps (exercises edge-block masking + the parallel batch axis).
    B2 = 200
    x2 = jax.random.normal(jax.random.PRNGKey(1), (B2, F_in), jnp.float32)
    ref2 = jnp.maximum(x2 @ w + b, 0.0)
    out2 = fc1_relu(x2, w, b, tm=128)
    jax.block_until_ready(out2)
    assert out2.shape == (B2, F_out)
    assert jnp.allclose(out2, ref2, atol=2e-2, rtol=2e-2)

    # bf16 output path (halves output HBM bytes when downstream tolerates it).
    out_bf = fc1_relu(x2, w, b, tm=128, out_dtype=jnp.bfloat16)
    jax.block_until_ready(out_bf)
    assert out_bf.dtype == jnp.bfloat16
    assert jnp.allclose(out_bf.astype(jnp.float32), ref2, atol=5e-2, rtol=5e-2)

    print("KERNEL_OK")
</pallas_src>

<mosaic_0001>
module attributes {stable_mosaic.version = 11 : i64} {
  func.func @_fc1_relu_kernel(%arg0: i32, %arg1: memref<8x864xf32, #tpu.memory_space<vmem>>, %arg2: memref<864x128xf32, #tpu.memory_space<vmem>>, %arg3: memref<1x128xf32, #tpu.memory_space<vmem>>, %arg4: memref<8x128xf32, #tpu.memory_space<vmem>>) attributes {dimension_semantics = [#tpu.dimension_semantics<parallel>], iteration_bounds = array<i64: 1>, scalar_prefetch = 0 : i64, scratch_operands = 0 : i64, tpu.core_type = #tpu.core_type<tc>, window_params = [{transform_indices = @transform_0, window_bounds = array<i64: 8, 864>}, {pipeline_mode = #tpu.pipeline_mode<synchronous>, transform_indices = @transform_1, window_bounds = array<i64: 864, 128>}, {pipeline_mode = #tpu.pipeline_mode<synchronous>, transform_indices = @transform_2, window_bounds = array<i64: 1, 128>}, {transform_indices = @transform_3, window_bounds = array<i64: 8, 128>}]} {
    %c0 = arith.constant 0 : index
    %c0_0 = arith.constant 0 : index
    %0 = vector.load %arg1[%c0, %c0_0] : memref<8x864xf32, #tpu.memory_space<vmem>>, vector<8x864xf32>
    %c0_1 = arith.constant 0 : index
    %c0_2 = arith.constant 0 : index
    %1 = vector.load %arg2[%c0_1, %c0_2] : memref<864x128xf32, #tpu.memory_space<vmem>>, vector<864x128xf32>
    %cst = arith.constant dense<0.000000e+00> : vector<8x128xf32>
    %2 = tpu.matmul %0, %1, %cst {dimension_numbers = #tpu.dot_dimension_numbers<[1], [0], [0], [1], [0, 0, 1, 1], [], []>} : vector<8x864xf32>, vector<864x128xf32>, vector<8x128xf32> -> vector<8x128xf32>
    %c0_3 = arith.constant 0 : index
    %c0_4 = arith.constant 0 : index
    %3 = vector.load %arg3[%c0_3, %c0_4] : memref<1x128xf32, #tpu.memory_space<vmem>>, vector<1x128xf32>
    %4 = vector.broadcast %3 : vector<1x128xf32> to vector<8x128xf32>
    %5 = arith.addf %2, %4 : vector<8x128xf32>
    %cst_5 = arith.constant 0.000000e+00 : f32
    %6 = vector.broadcast %cst_5 : f32 to vector<8x128xf32>
    %7 = arith.maximumf %5, %6 : vector<8x128xf32>
    %c0_6 = arith.constant 0 : index
    %c0_7 = arith.constant 0 : index
    %8 = vector.load %arg4[%c0_6, %c0_7] : memref<8x128xf32, #tpu.memory_space<vmem>>, vector<8x128xf32>
    tpu.vector_store %arg4[%c0_6, %c0_7], %7 {strides = array<i32>} : memref<8x128xf32, #tpu.memory_space<vmem>>, vector<8x128xf32>,
    return
  }
  func.func @transform_0(%arg0: i32) -> (i32, i32) {
    %c0_i32 = arith.constant 0 : i32
    %c0_i32_0 = arith.constant 0 : i32
    return %arg0, %c0_i32 : i32, i32
  }
  func.func @transform_1(%arg0: i32) -> (i32, i32) {
    %c0_i32 = arith.constant 0 : i32
    %c0_i32_0 = arith.constant 0 : i32
    %c0_i32_1 = arith.constant 0 : i32
    return %c0_i32, %c0_i32_0 : i32, i32
  }
  func.func @transform_2(%arg0: i32) -> (i32, i32) {
    %c0_i32 = arith.constant 0 : i32
    %c0_i32_0 = arith.constant 0 : i32
    %c0_i32_1 = arith.constant 0 : i32
    return %c0_i32, %c0_i32_0 : i32, i32
  }
  func.func @transform_3(%arg0: i32) -> (i32, i32) {
    %c0_i32 = arith.constant 0 : i32
    %c0_i32_0 = arith.constant 0 : i32
    return %arg0, %c0_i32 : i32, i32
  }
}

</mosaic_0001>

<bundles_post_ra>
// kernel: tpu_custom_call.1
= control target key start
LH: loop header
LB: loop body
LE: loop exit
PB: predicated region body
PF: predicated region fallthrough
CT: control target
= control target key end

     0   :  { %8 = vsyncpa [#allocation3], 0  ;;  %s886_s0 = inlined_call_operand.hbm [shape: f32[8,864], index: 0, kind: input, shape index: {}]   ;;  %s887_s1 = inlined_call_operand.hbm [shape: f32[864,128], index: 1, kind: input, shape index: {}]   ;;  %s888_s2 = inlined_call_operand.vmem [shape: f32[1,128], index: 2, kind: input, shape index: {}]   ;;  %s889_s3 = inlined_call_operand.hbm [shape: f32[8,128], index: 3, kind: output, shape index: {}]  }
   0x1   :  { %9 = vsyncpa [#allocation6], 0 }
   0x2   :  { %10 = vsyncpa [#allocation4], 0  ;;  %s806_s12 = smov [#allocation2]   ;;  %s807_s14 = smov [#allocation5]  }
   0x3   :  { %s17_s13 = sshll.u32 %s806_s12, 4  ;;  %s26_s15 = sshll.u32 %s807_s14, 4  ;;  %s18_s13 = int_to_ptr.vmem [resolvable:$true] %s17_s13  ;;  %s834_s15 = int_to_ptr.vmem [resolvable:$true] %s26_s15 }
   0x4   :  { %s734_s18 = scalar_lea.hbm %s886_s0, 896 }
   0x5   :  { %p735_p0 = scmp.ne.s32.totalorder %s886_s0, %s734_s18  ;;  %p738_p1 = scmp.lt.u32.totalorder %s734_s18, %s886_s0 }
   0x7   :  { %p740_p2 = pnand %p738_p1, %p735_p0 }
   0x9   :  { %743 = shalt.err (!%p740_p2)
}
   0xa   :  { %s744_s23 = scalar_lea.vmem %s18_s13, 896  ;;  %p749_p4 = scmp.lt.s32.totalorder %s18_s13, %s18_s13 }
   0xb   :  { %p745_p3 = scmp.ne.s32.totalorder %s18_s13, %s744_s23  ;;  %p750_p5 = scmp.lt.s32.totalorder %s744_s23, %s744_s23 }
   0xd   :  { %p751_p6 = por %p750_p5, %p749_p4 }
   0xf   :  { %p752_p7 = pnand %p751_p6, %p745_p3 }
  0x11   :  { %755 = shalt.err (!%p752_p7)
}
  0x12   :  { %20 = dma.hbm_to_vmem [thread:$0]  %s886_s0, 896, %s18_s13, [#allocation3]  }
  0x13   :  { %s756_s28 = scalar_lea.hbm %s887_s1, 13824 }
  0x14   :  { %p757_p8 = scmp.ne.s32.totalorder %s887_s1, %s756_s28  ;;  %p760_p9 = scmp.lt.u32.totalorder %s756_s28, %s887_s1 }
  0x16   :  { %p762_p10 = pnand %p760_p9, %p757_p8 }
  0x18   :  { %765 = shalt.err (!%p762_p10)
}
  0x19   :  { %s766_s6 = scalar_lea.vmem %s834_s15, 13824  ;;  %p771_p12 = scmp.lt.s32.totalorder %s834_s15, %s834_s15 }
  0x1a   :  { %p767_p11 = scmp.ne.s32.totalorder %s834_s15, %s766_s6  ;;  %p772_p13 = scmp.lt.s32.totalorder %s766_s6, %s766_s6 }
  0x1c   :  { %p773_p0 = por %p772_p13, %p771_p12 }
  0x1e   :  { %p774_p1 = pnand %p773_p0, %p767_p11 }
  0x20   :  { %777 = shalt.err (!%p774_p1)
}
  0x21   :  { %s808_s0 = smov 128   ;;  %s809_s7 = smov 8  }
  0x22   :  { %32 = dma.hbm_to_vmem [thread:$0]  %s887_s1, 13824, %s834_s15, [#allocation6], %s808_s0, %s808_s0, %s809_s7  }
  0x23   :  { %800 = dma.done.wait [#allocation3], 896  }
  0x24   :  { %801 = vsyncadd [#allocation3], 4294966400 }
  0x25   :  { %802 = dma.done.wait [#allocation6], 13824  }
  0x26   :  { %803 = vsyncadd [#allocation6], 4294953472  ;;  %v64_v0 = vld [vmem:[#allocation5 + $0x80] sm:$0xff]  ;;  %v65_v1 = vld [vmem:[#allocation5 + $0x88] sm:$0xff]  ;;  %vm811_vm0 = vmmov 0   ;;  %vm163_vm1 = vcmask 785408  }
  0x27   :  { %v48_v2 = vld [vmem:[#allocation5] sm:$0xff]  ;;  %v612_v3 = vpack.c.bf16 %v65_v1, %v64_v0  ;;  %v49_v4 = vld [vmem:[#allocation5 + $0x8] sm:$0xff]  ;;  %v66_v11 = vld [vmem:[#allocation5 + $0x90] sm:$0xff]  ;;  %s813_s11 = smov [#allocation7]  }
  0x28   :  { %v96_v5 = vld [vmem:[#allocation5 + $0x180] sm:$0xff]  ;;  %v97_v6 = vld [vmem:[#allocation5 + $0x188] sm:$0xff]  ;;  %v614_v7 = vpack.c.bf16 %v49_v4, %v48_v2  ;;  %v67_v13 = vld [vmem:[#allocation5 + $0x98] sm:$0xff]  ;;  %s455_s12 = sshll.u32 %s813_s11, 4  ;;  %s456_s12 = int_to_ptr.vmem [resolvable:$true] %s455_s12 }
  0x29   :  { %v644_v8 = vpack.c.bf16 %v97_v6, %v96_v5  ;;  %v80_v9 = vld [vmem:[#allocation5 + $0x100] sm:$0xff]  ;;  %v81_v10 = vld [vmem:[#allocation5 + $0x108] sm:$0xff]  ;;  %613 = vmatprep.subr.bf16.mxu0 %v612_v3  ;;  %v50_v14 = vld [vmem:[#allocation5 + $0x10] sm:$0xff]  ;;  %v616_v16 = vpack.c.bf16 %v67_v13, %v66_v11  ;;  %p783_p3 = scmp.lt.s32.totalorder %s456_s12, %s456_s12 }
  0x2a   :  { %v646_v12 = vpack.c.bf16 %v81_v10, %v80_v9  ;;  %v51_v15 = vld [vmem:[#allocation5 + $0x18] sm:$0xff]  ;;  %615 = vmatpush3.bf16.msra.mxu0 %v614_v7  ;;  %v98_v18 = vld [vmem:[#allocation5 + $0x190] sm:$0xff]  ;;  %v68_v23 = vld [vmem:[#allocation5 + $0xa0] sm:$0xff] }
  0x2b   :  { %645 = vmatprep.subr.bf16.mxu1 %v644_v8  ;;  %v618_v17 = vpack.c.bf16 %v51_v15, %v50_v14  ;;  %v99_v19 = vld [vmem:[#allocation5 + $0x198] sm:$0xff]  ;;  %v82_v20 = vld [vmem:[#allocation5 + $0x110] sm:$0xff]  ;;  %v69_v24 = vld [vmem:[#allocation5 + $0xa8] sm:$0xff]  ;;  %617 = vmatprep.subr.bf16.mxu0 %v616_v16 }
  0x2c   :  { %647 = vmatpush3.bf16.msra.mxu1 %v646_v12  ;;  %v648_v21 = vpack.c.bf16 %v99_v19, %v98_v18  ;;  %v83_v22 = vld [vmem:[#allocation5 + $0x118] sm:$0xff]  ;;  %v620_v26 = vpack.c.bf16 %v69_v24, %v68_v23  ;;  %v52_v27 = vld [vmem:[#allocation5 + $0x20] sm:$0xff]  ;;  %v53_v28 = vld [vmem:[#allocation5 + $0x28] sm:$0xff] }
  0x2d   :  { %v650_v25 = vpack.c.bf16 %v83_v22, %v82_v20  ;;  %v100_v29 = vld [vmem:[#allocation5 + $0x1a0] sm:$0xff]  ;;  %v101_v30 = vld [vmem:[#allocation5 + $0x1a8] sm:$0xff]  ;;  %v622_v33 = vpack.c.bf16 %v53_v28, %v52_v27  ;;  %v70_v35 = vld [vmem:[#allocation5 + $0xb0] sm:$0xff] }
  0x2e   :  { %649 = vmatprep.subr.bf16.mxu1 %v648_v21  ;;  %v84_v31 = vld [vmem:[#allocation5 + $0x120] sm:$0xff]  ;;  %v85_v32 = vld [vmem:[#allocation5 + $0x128] sm:$0xff]  ;;  %619 = vmatpush3.bf16.msra.mxu0 %v618_v17  ;;  %v652_v34 = vpack.c.bf16 %v101_v30, %v100_v29  ;;  %v71_v36 = vld [vmem:[#allocation5 + $0xb8] sm:$0xff] }
  0x2f   :  { %v54_v37 = vld [vmem:[#allocation5 + $0x30] sm:$0xff]  ;;  %621 = vmatprep.subr.bf16.mxu0 %v620_v26  ;;  %v654_v38 = vpack.c.bf16 %v85_v32, %v84_v31  ;;  %v624_v39 = vpack.c.bf16 %v71_v36, %v70_v35  ;;  %v55_v40 = vld [vmem:[#allocation5 + $0x38] sm:$0xff]  ;;  %v72_v46 = vld [vmem:[#allocation5 + $0xc0] sm:$0xff] }
  0x30   :  { %651 = vmatpush3.bf16.msra.mxu1 %v650_v25  ;;  %v102_v41 = vld [vmem:[#allocation5 + $0x1b0] sm:$0xff]  ;;  %v103_v42 = vld [vmem:[#allocation5 + $0x1b8] sm:$0xff]  ;;  %v73_v47 = vld [vmem:[#allocation5 + $0xc8] sm:$0xff]  ;;  %v626_v48 = vpack.c.bf16 %v55_v40, %v54_v37 }
  0x31   :  { %653 = vmatprep.subr.bf16.mxu1 %v652_v34  ;;  %v656_v43 = vpack.c.bf16 %v103_v42, %v102_v41  ;;  %v86_v44 = vld [vmem:[#allocation5 + $0x130] sm:$0xff]  ;;  %v87_v45 = vld [vmem:[#allocation5 + $0x138] sm:$0xff]  ;;  %v104_v49 = vld [vmem:[#allocation5 + $0x1c0] sm:$0xff]  ;;  %v628_v52 = vpack.c.bf16 %v73_v47, %v72_v46 }
  0x32   :  { %623 = vmatpush3.bf16.msra.mxu0 %v622_v33  ;;  %v105_v50 = vld [vmem:[#allocation5 + $0x1c8] sm:$0xff]  ;;  %v658_v51 = vpack.c.bf16 %v87_v45, %v86_v44  ;;  %v56_v53 = vld [vmem:[#allocation5 + $0x40] sm:$0xff]  ;;  %v74_v58 = vld [vmem:[#allocation5 + $0xd0] sm:$0xff] }
  0x33   :  { %625 = vmatprep.subr.bf16.mxu0 %v624_v39  ;;  %v57_v54 = vld [vmem:[#allocation5 + $0x48] sm:$0xff]  ;;  %v88_v55 = vld [vmem:[#allocation5 + $0x140] sm:$0xff]  ;;  %v660_v56 = vpack.c.bf16 %v105_v50, %v104_v49  ;;  %v75_v59 = vld [vmem:[#allocation5 + $0xd8] sm:$0xff] }
  0x34   :  { %655 = vmatpush3.bf16.msra.mxu1 %v654_v38  ;;  %v89_v57 = vld [vmem:[#allocation5 + $0x148] sm:$0xff]  ;;  %v106_v60 = vld [vmem:[#allocation5 + $0x1d0] sm:$0xff]  ;;  %v107_v61 = vld [vmem:[#allocation5 + $0x1d8] sm:$0xff]  ;;  %v630_v62 = vpack.c.bf16 %v57_v54, %v56_v53  ;;  %v632_v0 = vpack.c.bf16 %v75_v59, %v74_v58 }
  0x35   :  { %657 = vmatprep.subr.bf16.mxu1 %v656_v43  ;;  %v662_v63 = vpack.c.bf16 %v89_v57, %v88_v55  ;;  %v58_v1 = vld [vmem:[#allocation5 + $0x50] sm:$0xff]  ;;  %v59_v2 = vld [vmem:[#allocation5 + $0x58] sm:$0xff]  ;;  %v664_v4 = vpack.c.bf16 %v107_v61, %v106_v60  ;;  %v76_v6 = vld [vmem:[#allocation5 + $0xe0] sm:$0xff] }
  0x36   :  { %627 = vmatpush3.bf16.msra.mxu0 %v626_v48  ;;  %v90_v3 = vld [vmem:[#allocation5 + $0x150] sm:$0xff]  ;;  %v91_v5 = vld [vmem:[#allocation5 + $0x158] sm:$0xff]  ;;  %v77_v7 = vld [vmem:[#allocation5 + $0xe8] sm:$0xff]  ;;  %v634_v10 = vpack.c.bf16 %v59_v2, %v58_v1  ;;  %v812_v1 = vmov 0.0  }
  0x37   :  { %629 = vmatprep.subr.bf16.mxu0 %v628_v52  ;;  %v108_v8 = vld [vmem:[#allocation5 + $0x1e0] sm:$0xff]  ;;  %v109_v9 = vld [vmem:[#allocation5 + $0x1e8] sm:$0xff]  ;;  %v42_v12 = vld [vmem:[#allocation2 + $0x8] sm:$0xff]  ;;  %v666_v13 = vpack.c.bf16 %v91_v5, %v90_v3  ;;  %v636_v14 = vpack.c.bf16 %v77_v7, %v76_v6  ;;  %v810_v52 = vmov 0.0|0.0  }
  0x38   :  { %659 = vmatpush3.bf16.msra.mxu1 %v658_v51  ;;  %v60_v11 = vld [vmem:[#allocation5 + $0x60] sm:$0xff]  ;;  %v61_v15 = vld [vmem:[#allocation5 + $0x68] sm:$0xff]  ;;  %v668_v18 = vpack.c.bf16 %v109_v9, %v108_v8  ;;  %v78_v19 = vld [vmem:[#allocation5 + $0xf0] sm:$0xff]  ;;  %231 = vmatprep.mubr.f32.mxu0 %v42_v12 }
  0x39   :  { %661 = vmatprep.subr.bf16.mxu1 %v660_v56  ;;  %v92_v16 = vld [vmem:[#allocation5 + $0x160] sm:$0xff]  ;;  %v93_v17 = vld [vmem:[#allocation5 + $0x168] sm:$0xff]  ;;  %v79_v20 = vld [vmem:[#allocation5 + $0xf8] sm:$0xff]  ;;  %v638_v24 = vpack.c.bf16 %v61_v15, %v60_v11 }
  0x3a   :  { %631 = vmatpush3.bf16.msra.mxu0 %v630_v62  ;;  %v44_v21 = vld [vmem:[#allocation2 + $0x18] sm:$0xff]  ;;  %v110_v22 = vld [vmem:[#allocation5 + $0x1f0] sm:$0xff]  ;;  %v111_v23 = vld [vmem:[#allocation5 + $0x1f8] sm:$0xff]  ;;  %v670_v25 = vpack.c.bf16 %v93_v17, %v92_v16  ;;  %v640_v26 = vpack.c.bf16 %v79_v20, %v78_v19 }
  0x3b   :  { %633 = vmatprep.subr.bf16.mxu0 %v632_v0  ;;  %301 = vmatprep.mubr.f32.mxu1 %v44_v21  ;;  %v62_v27 = vld [vmem:[#allocation5 + $0x70] sm:$0xff]  ;;  %v63_v28 = vld [vmem:[#allocation5 + $0x78] sm:$0xff]  ;;  %v672_v30 = vpack.c.bf16 %v111_v23, %v110_v22  ;;  %v128_v32 = vld [vmem:[#allocation5 + $0x280] sm:$0xff] }
  0x3c   :  { %663 = vmatpush3.bf16.msra.mxu1 %v662_v63  ;;  %v94_v29 = vld [vmem:[#allocation5 + $0x170] sm:$0xff]  ;;  %v95_v31 = vld [vmem:[#allocation5 + $0x178] sm:$0xff]  ;;  %v129_v33 = vld [vmem:[#allocation5 + $0x288] sm:$0xff]  ;;  %v642_v34 = vpack.c.bf16 %v63_v28, %v62_v27 }
  0x3d   :  { %665 = vmatprep.subr.bf16.mxu1 %v664_v4  ;;  %v674_v35 = vpack.c.bf16 %v95_v31, %v94_v29  ;;  %v676_v36 = vpack.c.bf16 %v129_v33, %v128_v32  ;;  %v112_v37 = vld [vmem:[#allocation5 + $0x200] sm:$0xff]  ;;  %v113_v38 = vld [vmem:[#allocation5 + $0x208] sm:$0xff]  ;;  %v130_v39 = vld [vmem:[#allocation5 + $0x290] sm:$0xff] }
  0x3e   :  { %635 = vmatpush3.bf16.msra.mxu0 %v634_v10  ;;  %v131_v40 = vld [vmem:[#allocation5 + $0x298] sm:$0xff]  ;;  %v144_v41 = vld [vmem:[#allocation5 + $0x300] sm:$0xff]  ;;  %v145_v42 = vld [vmem:[#allocation5 + $0x308] sm:$0xff]  ;;  %v678_v44 = vpack.c.bf16 %v113_v38, %v112_v37 }
  0x3f   :  { %637 = vmatprep.subr.bf16.mxu0 %v636_v14  ;;  %v41_v43 = vld [vmem:[#allocation2] sm:$0xff]  ;;  %v43_v45 = vld [vmem:[#allocation2 + $0x10] sm:$0xff]  ;;  %v680_v46 = vpack.c.bf16 %v131_v40, %v130_v39  ;;  %v114_v47 = vld [vmem:[#allocation5 + $0x210] sm:$0xff]  ;;  %v709_v50 = vpack.c.bf16 %v145_v42, %v144_v41 }
  0x40   :  { %667 = vmatpush3.bf16.msra.mxu1 %v666_v13  ;;  %v115_v48 = vld [vmem:[#allocation5 + $0x218] sm:$0xff]  ;;  %v132_v49 = vld [vmem:[#allocation5 + $0x2a0] sm:$0xff]  ;;  %v133_v51 = vld [vmem:[#allocation5 + $0x2a8] sm:$0xff] }
  0x41   :  { %669 = vmatprep.subr.bf16.mxu1 %v668_v18  ;;  %v146_v53 = vld [vmem:[#allocation5 + $0x310] sm:$0xff]  ;;  %v147_v54 = vld [vmem:[#allocation5 + $0x318] sm:$0xff]  ;;  %v682_v55 = vpack.c.bf16 %v115_v48, %v114_v47  ;;  %v684_v57 = vpack.c.bf16 %v133_v51, %v132_v49  ;;  %v116_v58 = vld [vmem:[#allocation5 + $0x220] sm:$0xff] }
  0x42   :  { %639 = vmatpush3.bf16.msra.mxu0 %v638_v24  ;;  %v46_v56 = vld [vmem:[#allocation2 + $0x28] sm:$0xff]  ;;  %v117_v59 = vld [vmem:[#allocation5 + $0x228] sm:$0xff]  ;;  %v712_v61 = vpack.c.bf16 %v147_v54, %v146_v53  ;;  %v135_v62 = vld [vmem:[#allocation5 + $0x2b8] sm:$0xff] }
  0x43   :  { %641 = vmatprep.subr.bf16.mxu0 %v640_v26  ;;  %v134_v60 = vld [vmem:[#allocation5 + $0x2b0] sm:$0xff]  ;;  %v148_v63 = vld [vmem:[#allocation5 + $0x320] sm:$0xff]  ;;  %v149_v0 = vld [vmem:[#allocation5 + $0x328] sm:$0xff]  ;;  %v686_v2 = vpack.c.bf16 %v117_v59, %v116_v58 }
  0x44   :  { %671 = vmatpush3.bf16.msra.mxu1 %v670_v25  ;;  %v688_v3 = vpack.c.bf16 %v135_v62, %v134_v60  ;;  %v118_v4 = vld [vmem:[#allocation5 + $0x230] sm:$0xff]  ;;  %v119_v5 = vld [vmem:[#allocation5 + $0x238] sm:$0xff]  ;;  %v136_v6 = vld [vmem:[#allocation5 + $0x2c0] sm:$0xff]  ;;  %v715_v7 = vpack.c.bf16 %v149_v0, %v148_v63 }
  0x45   :  { %673 = vmatprep.subr.bf16.mxu1 %v672_v30  ;;  %v137_v8 = vld [vmem:[#allocation5 + $0x2c8] sm:$0xff]  ;;  %v150_v9 = vld [vmem:[#allocation5 + $0x330] sm:$0xff]  ;;  %v151_v10 = vld [vmem:[#allocation5 + $0x338] sm:$0xff]  ;;  %v690_v11 = vpack.c.bf16 %v119_v5, %v118_v4 }
  0x46   :  { %643 = vmatpush3.bf16.msra.mxu0 %v642_v34  ;;  %v692_v12 = vpack.c.bf16 %v137_v8, %v136_v6  ;;  %v120_v13 = vld [vmem:[#allocation5 + $0x240] sm:$0xff]  ;;  %v121_v14 = vld [vmem:[#allocation5 + $0x248] sm:$0xff]  ;;  %v138_v15 = vld [vmem:[#allocation5 + $0x2d0] sm:$0xff]  ;;  %v718_v16 = vpack.c.bf16 %v151_v10, %v150_v9 }
  0x47   :  { %677 = vmatprep.subr.bf16.mxu0 %v676_v36  ;;  %v139_v17 = vld [vmem:[#allocation5 + $0x2d8] sm:$0xff]  ;;  %v152_v18 = vld [vmem:[#allocation5 + $0x340] sm:$0xff]  ;;  %v153_v19 = vld [vmem:[#allocation5 + $0x348] sm:$0xff]  ;;  %v694_v20 = vpack.c.bf16 %v121_v14, %v120_v13 }
  0x48   :  { %675 = vmatpush3.bf16.msra.mxu1 %v674_v35  ;;  %v696_v21 = vpack.c.bf16 %v139_v17, %v138_v15  ;;  %v122_v22 = vld [vmem:[#allocation5 + $0x250] sm:$0xff]  ;;  %v123_v23 = vld [vmem:[#allocation5 + $0x258] sm:$0xff]  ;;  %v140_v24 = vld [vmem:[#allocation5 + $0x2e0] sm:$0xff]  ;;  %v721_v25 = vpack.c.bf16 %v153_v19, %v152_v18 }
  0x49   :  { %708 = vmatprep.subr.bf16.mxu1 %v810_v52  ;;  %232 = vmatmul.mubr.f32.vlgmr.msra.gmra.mrb[0].mxu0 %v41_v43  ;;  %v141_v26 = vld [vmem:[#allocation5 + $0x2e8] sm:$0xff]  ;;  %v154_v27 = vld [vmem:[#allocation5 + $0x350] sm:$0xff]  ;;  %v155_v28 = vld [vmem:[#allocation5 + $0x358] sm:$0xff]  ;;  %v698_v29 = vpack.c.bf16 %v123_v23, %v122_v22 }
  0x4a   :  { %679 = vmatpush3.bf16.msra.mxu0 %v678_v44  ;;  %371 = vmatprep.mubr.f32.mxu0 %v46_v56  ;;  %v700_v30 = vpack.c.bf16 %v141_v26, %v140_v24  ;;  %v124_v31 = vld [vmem:[#allocation5 + $0x260] sm:$0xff]  ;;  %v125_v32 = vld [vmem:[#allocation5 + $0x268] sm:$0xff]  ;;  %v724_v33 = vpack.c.bf16 %v155_v28, %v154_v27  ;;  %v142_v34 = vld [vmem:[#allocation5 + $0x2f0] sm:$0xff] }
  0x4b   :  { %302 = vmatmul.mubr.f32.vlgmr.msra.gmra.mrb[0].mxu1 %v43_v45  ;;  %681 = vmatprep.subr.bf16.mxu0 %v680_v46  ;;  %v143_v35 = vld [vmem:[#allocation5 + $0x2f8] sm:$0xff]  ;;  %v702_v36 = vpack.c.bf16 %v125_v32, %v124_v31  ;;  %v126_v38 = vld [vmem:[#allocation5 + $0x270] sm:$0xff]  ;;  %v45_v42 = vld [vmem:[#allocation2 + $0x20] sm:$0xff] }
  0x4c   :  { %710 = vmatpush3.bf16.msra.mxu1 %v709_v50  ;;  %609 = vmatprep.mubr.msk.f32.mxu1 %vm811_vm0, %v812_v1  ;;  %v704_v37 = vpack.c.bf16 %v143_v35, %v142_v34  ;;  %v127_v39 = vld [vmem:[#allocation5 + $0x278] sm:$0xff]  ;;  %v465_v44 = vld [vmem:[%s888_s2] ss:$0 sm:$0xff]  ;;  %s778_s2 = scalar_lea.vmem %s456_s12, 128 }
  0x4d   :  { %711 = vmatprep.subr.bf16.mxu1 %v810_v52  ;;  %v47_v40 = vld [vmem:[#allocation2 + $0x30] sm:$0xff]  ;;  %v706_v41 = vpack.c.bf16 %v127_v39, %v126_v38  ;;  %p779_p2 = scmp.ne.s32.totalorder %s456_s12, %s778_s2  ;;  %p784_p4 = scmp.lt.s32.totalorder %s778_s2, %s778_s2 }
  0x4e   :  { %683 = vmatpush3.bf16.msra.mxu0 %v682_v55 }
  0x4f   :  { %685 = vmatprep.subr.bf16.mxu0 %v684_v57  ;;  %p785_p5 = por %p784_p4, %p783_p3 }
  0x50   :  { %713 = vmatpush3.bf16.msra.mxu1 %v712_v61 }
  0x51   :  { %714 = vmatprep.subr.bf16.mxu1 %v810_v52  ;;  %p786_p6 = pnand %p785_p5, %p779_p2 }
  0x52   :  { %687 = vmatpush3.bf16.msra.mxu0 %v686_v2 }
  0x53   :  { %689 = vmatprep.subr.bf16.mxu0 %v688_v3 }
  0x54   :  { %716 = vmatpush3.bf16.msra.mxu1 %v715_v7 }
  0x55   :  { %717 = vmatprep.subr.bf16.mxu1 %v810_v52 }
  0x56   :  { %691 = vmatpush3.bf16.msra.mxu0 %v690_v11 }
  0x57   :  { %693 = vmatprep.subr.bf16.mxu0 %v692_v12 }
  0x58   :  { %719 = vmatpush3.bf16.msra.mxu1 %v718_v16 }
  0x59   :  { %720 = vmatprep.subr.bf16.mxu1 %v810_v52 }
  0x5a   :  { %695 = vmatpush3.bf16.msra.mxu0 %v694_v20 }
  0x5b   :  { %697 = vmatprep.subr.bf16.mxu0 %v696_v21 }
  0x5c   :  { %722 = vmatpush3.bf16.msra.mxu1 %v721_v25 }
  0x5d   :  { %723 = vmatprep.subr.bf16.mxu1 %v810_v52 }
  0x5e   :  { %699 = vmatpush3.bf16.msra.mxu0 %v698_v29 }
  0x5f   :  { %701 = vmatprep.subr.bf16.mxu0 %v700_v30 }
  0x60   :  { %725 = vmatpush3.bf16.msra.mxu1 %v724_v33 }
  0x62   :  { %703 = vmatpush3.bf16.msra.mxu0 %v702_v36 }
  0x63   :  { %610 = vmatmul.mubr.msk.f32.vlgmr.msra.gmra.mrb[2].mxu1 %vm163_vm1, %v47_v40  ;;  %705 = vmatprep.subr.bf16.mxu0 %v704_v37 }
  0x66   :  { %707 = vmatpush3.bf16.msra.mxu0 %v706_v41 }
  0x69   :  { %372 = vmatmul.mubr.f32.vlgmr.msra.gmra.mrb[2].mxu0 %v45_v42 }
 0x11c   :  { %v499_v43 = vpop.f32.mrb[0].mxu0 }
 0x11d   :  { %v500_v45 = vpop.f32.mrb[1].mxu0 }
 0x11e   :  { %v534_v46 = vpop.f32.mrb[0].mxu1  ;;  %v501_v47 = vadd.f32 %v500_v45, %v499_v43 }
 0x11f   :  { %v535_v48 = vpop.f32.mrb[1].mxu1 }
 0x120   :  { %v536_v49 = vadd.f32 %v535_v48, %v534_v46  ;;  %v234_v50 = vadd.f32 %v501_v47, %v465_v44 }
 0x122   :  { %v304_v51 = vadd.f32 %v536_v49, %v234_v50 }
 0x136   :  { %v443_v52 = vpop.f32.mrb[2].mxu1 }
 0x137   :  { %v611_v53 = vpop.f32.mrb[3].mxu1 }
 0x13c   :  { %v569_v54 = vpop.f32.mrb[2].mxu0 }
 0x13d   :  { %v570_v55 = vpop.f32.mrb[3].mxu0 }
 0x13e   :  { %v571_v56 = vadd.f32 %v570_v55, %v569_v54 }
 0x140   :  { %v374_v57 = vadd.f32 %v571_v56, %v304_v51 }
 0x142   :  { %v444_v58 = vadd.f32 %v443_v52, %v374_v57 }
 0x144   :  { %v447_v59 = vmax.f32 %v444_v58, 0.0 }
 0x146   :  { %448 = vst [vmem:[#allocation7] sm:$0xff] %v447_v59 }
 0x147   :  { %789 = shalt.err (!%p786_p6)
}
 0x148   :  { %s790_s15 = scalar_lea.hbm %s889_s3, 128 }
 0x149   :  { %p791_p7 = scmp.ne.s32.totalorder %s889_s3, %s790_s15  ;;  %p794_p8 = scmp.lt.u32.totalorder %s790_s15, %s889_s3 }
 0x14b   :  { %p796_p9 = pnand %p794_p8, %p791_p7 }
 0x14d   :  { %799 = shalt.err (!%p796_p9)
}
 0x14e   :  { %458 = dma.vmem_to_hbm [thread:$0]  %s456_s12, 128, %s889_s3, [#allocation4]  }
 0x14f   :  { %804 = dma.done.wait [#allocation4], 128  }
 0x150   :  { %805 = vsyncadd [#allocation4], 4294967168 }
 0x151   :  { %462 = vsyncpa [#allocation3], 1 }
 0x152   :  { %463 = vsyncpa [#allocation6], 1 }
 0x153   :  { %464 = vsyncpa [#allocation4], 1 }

</bundles_post_ra>
